<compile_context>
chip_gen: v6e
topology: v6e:2x2x1
jax: 0.10.0
libtpu: 0.0.40
codegen_flags: <defaults>
</compile_context>

<pallas_src>
import jax
import jax.numpy as jnp
from jax.experimental import pallas as pl
from jax.experimental.pallas import tpu as pltpu

_LANES = 128


def _square_kernel(x_ref, o_ref):
    # Elementwise square of the current (block_rows, 128) lane-dense block.
    x = x_ref[...]
    o_ref[...] = x * x


def dummy_head_forward(hs, *, block_bytes=2 << 20):
    """Pallas implementation of DummyHead.forward's compute (hs ** 2).

    The torch forward has no `return` (returns None); here we return the
    squared tensor so the kernel result is observable.  Same shape & dtype.
    """
    orig_shape = hs.shape
    dtype = hs.dtype
    itemsize = jnp.dtype(dtype).itemsize
    n = hs.size

    # Minimum sublane tile for this dtype (packed vregs for sub-32-bit types).
    sub = {4: 8, 2: 16, 1: 32}.get(itemsize, 8)

    # Lane-dense view: (rows, 128).  For standard DETR shapes the element
    # count is already a multiple of 128, so no pad/slice glue is emitted.
    flat = hs.reshape(-1)
    pad = (-n) % _LANES
    if pad:
        flat = jnp.pad(flat, (0, pad))
    rows = (n + pad) // _LANES
    x2d = flat.reshape(rows, _LANES)

    # Block choice: one full-extent block for small inputs (exempt from the
    # (8,128) divisibility rule), otherwise the largest sublane-aligned row
    # tile within the per-buffer byte budget; ragged tail blocks are masked
    # by Pallas automatically.
    max_block_rows = max(sub, (block_bytes // (_LANES * itemsize)) // sub * sub)
    if rows <= max_block_rows:
        block_rows = rows
        grid = (1,)
    else:
        block_rows = max_block_rows
        grid = (pl.cdiv(rows, block_rows),)

    out2d = pl.pallas_call(
        _square_kernel,
        out_shape=jax.ShapeDtypeStruct((rows, _LANES), dtype),
        grid=grid,
        in_specs=[pl.BlockSpec((block_rows, _LANES), lambda i: (i, 0))],
        out_specs=pl.BlockSpec((block_rows, _LANES), lambda i: (i, 0)),
        input_output_aliases={0: 0},  # square in place: output reuses input HBM
        compiler_params=pltpu.CompilerParams(
            dimension_semantics=("parallel",),
        ),
    )(x2d)

    out_flat = out2d.reshape(-1)
    if pad:
        out_flat = out_flat[:n]
    return out_flat.reshape(orig_shape)


if __name__ == "__main__":
    # DummyHead.__init__ defines no parameters, so only the input is needed.
    key = jax.random.PRNGKey(0)
    # (num_decoder_layers=6, batch=2, num_queries=8, hidden=32)
    hs = jax.random.normal(key, (6, 2, 8, 32), dtype=jnp.float32)

    # Reference computed before the kernel call (robust even if the input
    # buffer ends up donated via the in-place alias under jit).
    ref = hs * hs
    expected_shape, expected_dtype = hs.shape, hs.dtype

    out = dummy_head_forward(hs)
    out = jax.block_until_ready(out)

    assert out.shape == expected_shape and out.dtype == expected_dtype
    assert jnp.allclose(out, ref, atol=0, rtol=0)

    print("KERNEL_OK")
</pallas_src>

<mosaic_0001>
module attributes {stable_mosaic.version = 11 : i64} {
  func.func @_square_kernel(%arg0: i32, %arg1: memref<24x128xf32, #tpu.memory_space<vmem>>, %arg2: memref<24x128xf32, #tpu.memory_space<vmem>>) attributes {dimension_semantics = [#tpu.dimension_semantics<parallel>], iteration_bounds = array<i64: 1>, scalar_prefetch = 0 : i64, scratch_operands = 0 : i64, tpu.core_type = #tpu.core_type<tc>, window_params = [{transform_indices = @transform_0, window_bounds = array<i64: 24, 128>}, {transform_indices = @transform_1, window_bounds = array<i64: 24, 128>}]} {
    %c0 = arith.constant 0 : index
    %c0_0 = arith.constant 0 : index
    %0 = vector.load %arg1[%c0, %c0_0] : memref<24x128xf32, #tpu.memory_space<vmem>>, vector<24x128xf32>
    %1 = arith.mulf %0, %0 : vector<24x128xf32>
    %c0_1 = arith.constant 0 : index
    %c0_2 = arith.constant 0 : index
    %2 = vector.load %arg2[%c0_1, %c0_2] : memref<24x128xf32, #tpu.memory_space<vmem>>, vector<24x128xf32>
    tpu.vector_store %arg2[%c0_1, %c0_2], %1 {strides = array<i32>} : memref<24x128xf32, #tpu.memory_space<vmem>>, vector<24x128xf32>,
    return
  }
  func.func @transform_0(%arg0: i32) -> (i32, i32) {
    %c0_i32 = arith.constant 0 : i32
    %c0_i32_0 = arith.constant 0 : i32
    return %arg0, %c0_i32 : i32, i32
  }
  func.func @transform_1(%arg0: i32) -> (i32, i32) {
    %c0_i32 = arith.constant 0 : i32
    %c0_i32_0 = arith.constant 0 : i32
    return %arg0, %c0_i32 : i32, i32
  }
}

</mosaic_0001>

<bundles_post_ra>
// kernel: tpu_custom_call.1
= control target key start
LH: loop header
LB: loop body
LE: loop exit
PB: predicated region body
PF: predicated region fallthrough
CT: control target
= control target key end

     0   :  { %6 = vsyncpa [#allocation3], 0  ;;  %s117_s0 = inlined_call_operand.hbm [shape: f32[24,128], index: 0, kind: input, shape index: {}, may-alias: {0,1}]   ;;  %s118_s1 = inlined_call_operand.hbm [shape: f32[24,128], index: 1, kind: output, shape index: {}, may-alias: {0,1}]  }
   0x1   :  { %7 = vsyncpa [#allocation4], 0  ;;  %s97_s6 = smov [#allocation2]  }
   0x2   :  { %s13_s7 = sshll.u32 %s97_s6, 4  ;;  %s14_s7 = int_to_ptr.vmem [resolvable:$true] %s13_s7 }
   0x3   :  { %s61_s8 = scalar_lea.vmem %s14_s7, 384  ;;  %p66_p1 = scmp.lt.s32.totalorder %s14_s7, %s14_s7 }
   0x4   :  { %p62_p0 = scmp.ne.s32.totalorder %s14_s7, %s61_s8  ;;  %p67_p2 = scmp.lt.s32.totalorder %s61_s8, %s61_s8 }
   0x6   :  { %p68_p3 = por %p67_p2, %p66_p1 }
   0x8   :  { %p69_p4 = pnand %p68_p3, %p62_p0 }
   0xa   :  { %72 = shalt.err (!%p69_p4)
}
   0xb   :  { %s98_s9 = smov 128   ;;  %s99_s10 = smov 8  }
   0xc   :  { %19 = dma.hbm_to_vmem [thread:$0]  %s117_s0, 384, %s14_s7, [#allocation3], %s98_s9, %s98_s9, %s99_s10  }
   0xd   :  { %93 = dma.done.wait [#allocation3], 384  }
   0xe   :  { %94 = vsyncadd [#allocation3], 4294966912  ;;  %s100_s13 = smov [#allocation5]   ;;  %v23_v0 = vld [vmem:[#allocation2] sm:$0xff]  ;;  %v24_v1 = vld [vmem:[#allocation2 + $0x8] sm:$0xff] }
   0xf   :  { %s37_s14 = sshll.u32 %s100_s13, 4  ;;  %v25_v2 = vld [vmem:[#allocation2 + $0x10] sm:$0xff]  ;;  %v26_v3 = vmul.f32 %v23_v0, %v23_v0  ;;  %v27_v4 = vmul.f32 %v24_v1, %v24_v1  ;;  %s38_s14 = int_to_ptr.vmem [resolvable:$true] %s37_s14 }
  0x10   :  { %v28_v5 = vmul.f32 %v25_v2, %v25_v2  ;;  %s73_s15 = scalar_lea.vmem %s38_s14, 384  ;;  %p78_p6 = scmp.lt.s32.totalorder %s38_s14, %s38_s14 }
  0x11   :  { %29 = vst [vmem:[#allocation5] sm:$0xff] %v26_v3  ;;  %30 = vst [vmem:[#allocation5 + $0x8] sm:$0xff] %v27_v4  ;;  %p74_p5 = scmp.ne.s32.totalorder %s38_s14, %s73_s15  ;;  %p79_p7 = scmp.lt.s32.totalorder %s73_s15, %s73_s15 }
  0x12   :  { %31 = vst [vmem:[#allocation5 + $0x10] sm:$0xff] %v28_v5 }
  0x13   :  { %p80_p8 = por %p79_p7, %p78_p6 }
  0x15   :  { %p81_p9 = pnand %p80_p8, %p74_p5 }
  0x17   :  { %84 = shalt.err (!%p81_p9)
}
  0x18   :  { %43 = dma.vmem_to_hbm [thread:$0]  %s38_s14, 384, %s118_s1, [#allocation4], %s98_s9, %s98_s9, %s99_s10  }
  0x19   :  { %95 = dma.done.wait [#allocation4], 384  }
  0x1a   :  { %96 = vsyncadd [#allocation4], 4294966912 }
  0x1b   :  { %47 = vsyncpa [#allocation3], 1 }
  0x1c   :  { %48 = vsyncpa [#allocation4], 1 }

</bundles_post_ra>
